<compile_context>
chip_gen: v7x
topology: tpu7x:2x2x1
jax: 0.10.0
libtpu: 0.0.40
codegen_flags: <defaults>
</compile_context>

<pallas_src>
import math

import jax
import jax.numpy as jnp
from jax.experimental import pallas as pl
from jax.experimental.pallas import tpu as pltpu


# ----------------------------------------------------------------------------
# Helpers
# ----------------------------------------------------------------------------
def _round_up(x: int, m: int) -> int:
    return ((x + m - 1) // m) * m


def _sublane_multiple(dtype) -> int:
    """Min second-minor tile multiple per dtype: f32->8, bf16->16, int8/fp8->32."""
    itemsize = jnp.dtype(dtype).itemsize
    return {4: 8, 2: 16, 1: 32}.get(itemsize, 8)


def _generation_block_bytes() -> int:
    """Pick a per-tile byte budget from the chip generation.

    v5e/v6e (128 MiB physical VMEM): 4 MiB tiles -> 4x double-buffered
    footprint = 16 MiB, within the 32 MiB scoped request below.
    v7x (64 MiB physical per TC): 2 MiB tiles so both TCs can run concurrently
    without blowing the scoped budget.
    """
    try:
        vmem = int(getattr(pltpu.get_tpu_info(), "vmem_capacity_bytes", 64 << 20))
    except Exception:
        vmem = 64 << 20
    return (4 << 20) if vmem >= (128 << 20) else (2 << 20)


def _maybe_buffered_spec(block_shape, index_map, buffers: int) -> pl.BlockSpec:
    """BlockSpec with optional deeper pipelining; falls back to default (2)."""
    if buffers > 2:
        try:
            return pl.BlockSpec(block_shape, index_map,
                                pipeline_mode=pl.Buffered(buffers))
        except TypeError:
            pass
    return pl.BlockSpec(block_shape, index_map)


# ----------------------------------------------------------------------------
# Variant 0: zero-copy pass-through (preferred when no fresh buffer is needed).
# ----------------------------------------------------------------------------
def passthrough_alias(x):
    """Pure pass-through: no kernel, no HBM traffic (input_output_aliases
    equivalent at the JAX level)."""
    return x


# ----------------------------------------------------------------------------
# Variant 1: HBM -> HBM DMA pass-through with multiple in-flight descriptors.
# ----------------------------------------------------------------------------
def _dma_copy_chunked_kernel(x_hbm, o_hbm, sems):
    n = x_hbm.shape[0]  # static chunk count
    copies = [
        pltpu.make_async_copy(x_hbm.at[i], o_hbm.at[i], sems.at[i])
        for i in range(n)
    ]
    for cp in copies:      # issue all DMAs first -> several outstanding
        cp.start()
    for cp in copies:      # then drain
        cp.wait()


def passthrough_dma(x, *, num_chunks: int = 4):
    """Copy `x` to a fresh buffer with `num_chunks` concurrent HBM->HBM DMAs."""
    orig_shape = x.shape
    H = orig_shape[-1]
    rows = max(1, math.prod(orig_shape[:-1]))

    # Largest chunk count <= num_chunks that divides rows (no ragged chunk).
    n = 1
    for c in range(min(num_chunks, rows), 0, -1):
        if rows % c == 0:
            n = c
            break

    x3 = x.reshape(n, rows // n, H)
    out3 = pl.pallas_call(
        _dma_copy_chunked_kernel,
        out_shape=jax.ShapeDtypeStruct(x3.shape, x3.dtype),
        in_specs=[pl.BlockSpec(memory_space=pl.ANY)],
        out_specs=pl.BlockSpec(memory_space=pl.ANY),
        scratch_shapes=[pltpu.SemaphoreType.DMA((n,))],
        compiler_params=pltpu.CompilerParams(has_side_effects=True),
    )(x3)
    return out3.reshape(orig_shape)


# ----------------------------------------------------------------------------
# Variant 2: tiled VMEM pass-through — scaffold for future adapter compute.
# ----------------------------------------------------------------------------
def _identity_tile_kernel(x_ref, o_ref):
    # TODO(synk): reference AdapterModel has no adapter layers; real fused
    # adapter compute (down-proj -> act -> up-proj -> residual with an f32
    # VMEM accumulator, K axis last / "arbitrary", 256-aligned MXU tiles on
    # v6e/v7x, 128 on v5e, dequant-to-bf16 for int8 weights on v7x) goes here.
    o_ref[...] = x_ref[...]


def passthrough_tiled(x, *, max_block_bytes: int | None = None):
    """Run hidden states [..., H] through a tiled Pallas identity kernel.

    Leading dims are flattened into one row axis; rows are padded so the tile
    divides exactly (no masked-store tail), tile_rows respects the dtype
    sublane multiple, and the tile is capped at ~rows/2 so the parallel grid
    axis has at least two steps (engages both v7x TensorCores).
    """
    orig_shape = x.shape
    H = orig_shape[-1]
    rows = max(1, math.prod(orig_shape[:-1]))
    x2 = x.reshape(rows, H)

    if max_block_bytes is None:
        max_block_bytes = _generation_block_bytes()

    sub = _sublane_multiple(x2.dtype)
    bytes_per_row = H * x2.dtype.itemsize

    budget_rows = max(sub, (max_block_bytes // bytes_per_row) // sub * sub)
    if rows > sub:
        # Cap at ceil(rows/2) so the grid has >= 2 steps when rows permit.
        half_cap = _round_up(-(-rows // 2), sub)
        tile_rows = max(sub, min(budget_rows, half_cap))
    else:
        tile_rows = _round_up(rows, sub)

    # Pad rows to a multiple of tile_rows -> exact division, no ragged block.
    padded_rows = _round_up(rows, tile_rows)
    if padded_rows != rows:
        x2 = jnp.pad(x2, ((0, padded_rows - rows), (0, 0)))

    steps = padded_rows // tile_rows
    buffers = 3 if steps >= 4 else 2  # deeper pipelining only on long grids

    out2 = pl.pallas_call(
        _identity_tile_kernel,
        out_shape=jax.ShapeDtypeStruct((padded_rows, H), x2.dtype),
        grid=(steps,),
        in_specs=[_maybe_buffered_spec((tile_rows, H), lambda i: (i, 0), buffers)],
        out_specs=_maybe_buffered_spec((tile_rows, H), lambda i: (i, 0), buffers),
        compiler_params=pltpu.CompilerParams(
            dimension_semantics=("parallel",),
            vmem_limit_bytes=32 << 20,  # covers <=3x double-buffered 4 MiB tiles
        ),
    )(x2)

    if padded_rows != rows:
        out2 = out2[:rows]
    return out2.reshape(orig_shape)


# ----------------------------------------------------------------------------
# Module mirror
# ----------------------------------------------------------------------------
class AdapterModel:
    """JAX mirror of the PyTorch AdapterModel (no parameters, forward -> None)."""

    def __init__(self, args, pretrained_model_config, n_rel):
        self.config = pretrained_model_config
        self.args = args
        # TODO(synk): reference __init__ creates no weights; nothing to initialize.

    def forward(self, pretrained_model_outputs, input_ids, attention_mask=None,
                token_type_ids=None, position_ids=None, head_mask=None,
                labels=None, subj_special_start_id=None, obj_special_start_id=None):
        # Matches the PyTorch forward exactly: no compute, returns None.
        return None

    # TODO(synk): save_pretrained is host-side file I/O; no Pallas equivalent.


if __name__ == "__main__":
    key = jax.random.PRNGKey(0)
    B, S, H = 2, 8, 128  # small shapes; H = 128 stays lane-aligned

    k_h, k_ids, k_big = jax.random.split(key, 3)
    hidden_states = jax.random.normal(k_h, (B, S, H), dtype=jnp.float32)
    pooled = hidden_states[:, 0, :]
    pretrained_model_outputs = (hidden_states, pooled)

    input_ids = jax.random.randint(k_ids, (B, S), 0, 1000, dtype=jnp.int32)
    attention_mask = jnp.ones((B, S), dtype=jnp.int32)

    # Zero-copy pass-through (preferred when no fresh buffer is required).
    assert passthrough_alias(hidden_states) is hidden_states

    # Chunked HBM->HBM DMA pass-through.
    out_dma = jax.block_until_ready(passthrough_dma(hidden_states))
    assert out_dma.shape == hidden_states.shape and out_dma.dtype == hidden_states.dtype
    assert bool(jnp.allclose(out_dma, hidden_states))

    # Tiled pass-through: f32 (8-row sublane), grid = (2,) -> both v7x TCs.
    out_tiled = jax.block_until_ready(passthrough_tiled(hidden_states))
    assert out_tiled.shape == hidden_states.shape and out_tiled.dtype == hidden_states.dtype
    assert bool(jnp.allclose(out_tiled, hidden_states))

    # bf16 exercises the dtype-aware 16-row sublane rounding.
    hs_bf16 = hidden_states.astype(jnp.bfloat16)
    out_bf16 = jax.block_until_ready(passthrough_tiled(hs_bf16))
    assert out_bf16.dtype == jnp.bfloat16
    assert bool(jnp.array_equal(out_bf16, hs_bf16))

    # Forced-small blocks -> many grid steps; exercises the deeper pipelining path.
    big = jax.random.normal(k_big, (4, 128, 256), dtype=jnp.float32)
    out_big = jax.block_until_ready(passthrough_tiled(big, max_block_bytes=64 << 10))
    assert out_big.shape == big.shape
    assert bool(jnp.allclose(out_big, big))

    # Module forward matches the PyTorch semantics: returns None, no TPU work.
    model = AdapterModel(args=None, pretrained_model_config=None, n_rel=0)
    result = model.forward(pretrained_model_outputs, input_ids,
                           attention_mask=attention_mask)
    assert result is None

    print("KERNEL_OK")
</pallas_src>

<mosaic_0001>
module attributes {stable_mosaic.version = 11 : i64} {
  func.func @_dma_copy_chunked_kernel(%arg0: memref<4x4x128xf32, #tpu.memory_space<any>>, %arg1: memref<4x4x128xf32, #tpu.memory_space<any>>, %arg2: memref<4x!tpu.dma_semaphore, #tpu.memory_space<semaphore_mem>>) attributes {dimension_semantics = [], scalar_prefetch = 0 : i64, scratch_operands = 1 : i64, tpu.core_type = #tpu.core_type<tc>} {
    %c0_i32 = arith.constant 0 : i32
    %c0_i32_0 = arith.constant 0 : i32
    %c0_i32_1 = arith.constant 0 : i32
    %c0_i32_2 = arith.constant 0 : i32
    %c0_i32_3 = arith.constant 0 : i32
    %0 = tpu.memref_slice %arg0[%c0_i32, %c0_i32_2, %c0_i32_3] : memref<4x4x128xf32, #tpu.memory_space<any>> -> memref<1x4x128xf32, #tpu.memory_space<any>>
    %1 = tpu.memref_squeeze %0 : memref<1x4x128xf32, #tpu.memory_space<any>> -> memref<4x128xf32, #tpu.memory_space<any>>
    %c0_i32_4 = arith.constant 0 : i32
    %c0_i32_5 = arith.constant 0 : i32
    %2 = tpu.memref_slice %arg1[%c0_i32_0, %c0_i32_4, %c0_i32_5] : memref<4x4x128xf32, #tpu.memory_space<any>> -> memref<1x4x128xf32, #tpu.memory_space<any>>
    %3 = tpu.memref_squeeze %2 : memref<1x4x128xf32, #tpu.memory_space<any>> -> memref<4x128xf32, #tpu.memory_space<any>>
    %4 = tpu.memref_slice %arg2[%c0_i32_1] : memref<4x!tpu.dma_semaphore, #tpu.memory_space<semaphore_mem>> -> memref<1x!tpu.dma_semaphore, #tpu.memory_space<semaphore_mem>>
    %5 = tpu.memref_squeeze %4 : memref<1x!tpu.dma_semaphore, #tpu.memory_space<semaphore_mem>> -> memref<!tpu.dma_semaphore, #tpu.memory_space<semaphore_mem>>
    tpu.enqueue_dma source(%1 : memref<4x128xf32, #tpu.memory_space<any>>) target(%3 : memref<4x128xf32, #tpu.memory_space<any>>) target_semaphore(%5 : memref<!tpu.dma_semaphore, #tpu.memory_space<semaphore_mem>>)
    %c1_i32 = arith.constant 1 : i32
    %c1_i32_6 = arith.constant 1 : i32
    %c1_i32_7 = arith.constant 1 : i32
    %c0_i32_8 = arith.constant 0 : i32
    %c0_i32_9 = arith.constant 0 : i32
    %6 = tpu.memref_slice %arg0[%c1_i32, %c0_i32_8, %c0_i32_9] : memref<4x4x128xf32, #tpu.memory_space<any>> -> memref<1x4x128xf32, #tpu.memory_space<any>>
    %7 = tpu.memref_squeeze %6 : memref<1x4x128xf32, #tpu.memory_space<any>> -> memref<4x128xf32, #tpu.memory_space<any>>
    %c0_i32_10 = arith.constant 0 : i32
    %c0_i32_11 = arith.constant 0 : i32
    %8 = tpu.memref_slice %arg1[%c1_i32_6, %c0_i32_10, %c0_i32_11] : memref<4x4x128xf32, #tpu.memory_space<any>> -> memref<1x4x128xf32, #tpu.memory_space<any>>
    %9 = tpu.memref_squeeze %8 : memref<1x4x128xf32, #tpu.memory_space<any>> -> memref<4x128xf32, #tpu.memory_space<any>>
    %10 = tpu.memref_slice %arg2[%c1_i32_7] : memref<4x!tpu.dma_semaphore, #tpu.memory_space<semaphore_mem>> -> memref<1x!tpu.dma_semaphore, #tpu.memory_space<semaphore_mem>>
    %11 = tpu.memref_squeeze %10 : memref<1x!tpu.dma_semaphore, #tpu.memory_space<semaphore_mem>> -> memref<!tpu.dma_semaphore, #tpu.memory_space<semaphore_mem>>
    tpu.enqueue_dma source(%7 : memref<4x128xf32, #tpu.memory_space<any>>) target(%9 : memref<4x128xf32, #tpu.memory_space<any>>) target_semaphore(%11 : memref<!tpu.dma_semaphore, #tpu.memory_space<semaphore_mem>>)
    %c2_i32 = arith.constant 2 : i32
    %c2_i32_12 = arith.constant 2 : i32
    %c2_i32_13 = arith.constant 2 : i32
    %c0_i32_14 = arith.constant 0 : i32
    %c0_i32_15 = arith.constant 0 : i32
    %12 = tpu.memref_slice %arg0[%c2_i32, %c0_i32_14, %c0_i32_15] : memref<4x4x128xf32, #tpu.memory_space<any>> -> memref<1x4x128xf32, #tpu.memory_space<any>>
    %13 = tpu.memref_squeeze %12 : memref<1x4x128xf32, #tpu.memory_space<any>> -> memref<4x128xf32, #tpu.memory_space<any>>
    %c0_i32_16 = arith.constant 0 : i32
    %c0_i32_17 = arith.constant 0 : i32
    %14 = tpu.memref_slice %arg1[%c2_i32_12, %c0_i32_16, %c0_i32_17] : memref<4x4x128xf32, #tpu.memory_space<any>> -> memref<1x4x128xf32, #tpu.memory_space<any>>
    %15 = tpu.memref_squeeze %14 : memref<1x4x128xf32, #tpu.memory_space<any>> -> memref<4x128xf32, #tpu.memory_space<any>>
    %16 = tpu.memref_slice %arg2[%c2_i32_13] : memref<4x!tpu.dma_semaphore, #tpu.memory_space<semaphore_mem>> -> memref<1x!tpu.dma_semaphore, #tpu.memory_space<semaphore_mem>>
    %17 = tpu.memref_squeeze %16 : memref<1x!tpu.dma_semaphore, #tpu.memory_space<semaphore_mem>> -> memref<!tpu.dma_semaphore, #tpu.memory_space<semaphore_mem>>
    tpu.enqueue_dma source(%13 : memref<4x128xf32, #tpu.memory_space<any>>) target(%15 : memref<4x128xf32, #tpu.memory_space<any>>) target_semaphore(%17 : memref<!tpu.dma_semaphore, #tpu.memory_space<semaphore_mem>>)
    %c3_i32 = arith.constant 3 : i32
    %c3_i32_18 = arith.constant 3 : i32
    %c3_i32_19 = arith.constant 3 : i32
    %c0_i32_20 = arith.constant 0 : i32
    %c0_i32_21 = arith.constant 0 : i32
    %18 = tpu.memref_slice %arg0[%c3_i32, %c0_i32_20, %c0_i32_21] : memref<4x4x128xf32, #tpu.memory_space<any>> -> memref<1x4x128xf32, #tpu.memory_space<any>>
    %19 = tpu.memref_squeeze %18 : memref<1x4x128xf32, #tpu.memory_space<any>> -> memref<4x128xf32, #tpu.memory_space<any>>
    %c0_i32_22 = arith.constant 0 : i32
    %c0_i32_23 = arith.constant 0 : i32
    %20 = tpu.memref_slice %arg1[%c3_i32_18, %c0_i32_22, %c0_i32_23] : memref<4x4x128xf32, #tpu.memory_space<any>> -> memref<1x4x128xf32, #tpu.memory_space<any>>
    %21 = tpu.memref_squeeze %20 : memref<1x4x128xf32, #tpu.memory_space<any>> -> memref<4x128xf32, #tpu.memory_space<any>>
    %22 = tpu.memref_slice %arg2[%c3_i32_19] : memref<4x!tpu.dma_semaphore, #tpu.memory_space<semaphore_mem>> -> memref<1x!tpu.dma_semaphore, #tpu.memory_space<semaphore_mem>>
    %23 = tpu.memref_squeeze %22 : memref<1x!tpu.dma_semaphore, #tpu.memory_space<semaphore_mem>> -> memref<!tpu.dma_semaphore, #tpu.memory_space<semaphore_mem>>
    tpu.enqueue_dma source(%19 : memref<4x128xf32, #tpu.memory_space<any>>) target(%21 : memref<4x128xf32, #tpu.memory_space<any>>) target_semaphore(%23 : memref<!tpu.dma_semaphore, #tpu.memory_space<semaphore_mem>>)
    %c0_i32_24 = arith.constant 0 : i32
    %c0_i32_25 = arith.constant 0 : i32
    %c0_i32_26 = arith.constant 0 : i32
    %c0_i32_27 = arith.constant 0 : i32
    %c0_i32_28 = arith.constant 0 : i32
    %24 = tpu.memref_slice %arg0[%c0_i32_24, %c0_i32_27, %c0_i32_28] : memref<4x4x128xf32, #tpu.memory_space<any>> -> memref<1x4x128xf32, #tpu.memory_space<any>>
    %25 = tpu.memref_squeeze %24 : memref<1x4x128xf32, #tpu.memory_space<any>> -> memref<4x128xf32, #tpu.memory_space<any>>
    %c0_i32_29 = arith.constant 0 : i32
    %c0_i32_30 = arith.constant 0 : i32
    %26 = tpu.memref_slice %arg1[%c0_i32_25, %c0_i32_29, %c0_i32_30] : memref<4x4x128xf32, #tpu.memory_space<any>> -> memref<1x4x128xf32, #tpu.memory_space<any>>
    %27 = tpu.memref_squeeze %26 : memref<1x4x128xf32, #tpu.memory_space<any>> -> memref<4x128xf32, #tpu.memory_space<any>>
    %28 = tpu.memref_slice %arg2[%c0_i32_26] : memref<4x!tpu.dma_semaphore, #tpu.memory_space<semaphore_mem>> -> memref<1x!tpu.dma_semaphore, #tpu.memory_space<semaphore_mem>>
    %29 = tpu.memref_squeeze %28 : memref<1x!tpu.dma_semaphore, #tpu.memory_space<semaphore_mem>> -> memref<!tpu.dma_semaphore, #tpu.memory_space<semaphore_mem>>
    tpu.wait_dma2 semaphore(%29 : memref<!tpu.dma_semaphore, #tpu.memory_space<semaphore_mem>>) src(%25 : memref<4x128xf32, #tpu.memory_space<any>>) dst(%27 : memref<4x128xf32, #tpu.memory_space<any>>)
    %c1_i32_31 = arith.constant 1 : i32
    %c1_i32_32 = arith.constant 1 : i32
    %c1_i32_33 = arith.constant 1 : i32
    %c0_i32_34 = arith.constant 0 : i32
    %c0_i32_35 = arith.constant 0 : i32
    %30 = tpu.memref_slice %arg0[%c1_i32_31, %c0_i32_34, %c0_i32_35] : memref<4x4x128xf32, #tpu.memory_space<any>> -> memref<1x4x128xf32, #tpu.memory_space<any>>
    %31 = tpu.memref_squeeze %30 : memref<1x4x128xf32, #tpu.memory_space<any>> -> memref<4x128xf32, #tpu.memory_space<any>>
    %c0_i32_36 = arith.constant 0 : i32
    %c0_i32_37 = arith.constant 0 : i32
    %32 = tpu.memref_slice %arg1[%c1_i32_32, %c0_i32_36, %c0_i32_37] : memref<4x4x128xf32, #tpu.memory_space<any>> -> memref<1x4x128xf32, #tpu.memory_space<any>>
    %33 = tpu.memref_squeeze %32 : memref<1x4x128xf32, #tpu.memory_space<any>> -> memref<4x128xf32, #tpu.memory_space<any>>
    %34 = tpu.memref_slice %arg2[%c1_i32_33] : memref<4x!tpu.dma_semaphore, #tpu.memory_space<semaphore_mem>> -> memref<1x!tpu.dma_semaphore, #tpu.memory_space<semaphore_mem>>
    %35 = tpu.memref_squeeze %34 : memref<1x!tpu.dma_semaphore, #tpu.memory_space<semaphore_mem>> -> memref<!tpu.dma_semaphore, #tpu.memory_space<semaphore_mem>>
    tpu.wait_dma2 semaphore(%35 : memref<!tpu.dma_semaphore, #tpu.memory_space<semaphore_mem>>) src(%31 : memref<4x128xf32, #tpu.memory_space<any>>) dst(%33 : memref<4x128xf32, #tpu.memory_space<any>>)
    %c2_i32_38 = arith.constant 2 : i32
    %c2_i32_39 = arith.constant 2 : i32
    %c2_i32_40 = arith.constant 2 : i32
    %c0_i32_41 = arith.constant 0 : i32
    %c0_i32_42 = arith.constant 0 : i32
    %36 = tpu.memref_slice %arg0[%c2_i32_38, %c0_i32_41, %c0_i32_42] : memref<4x4x128xf32, #tpu.memory_space<any>> -> memref<1x4x128xf32, #tpu.memory_space<any>>
    %37 = tpu.memref_squeeze %36 : memref<1x4x128xf32, #tpu.memory_space<any>> -> memref<4x128xf32, #tpu.memory_space<any>>
    %c0_i32_43 = arith.constant 0 : i32
    %c0_i32_44 = arith.constant 0 : i32
    %38 = tpu.memref_slice %arg1[%c2_i32_39, %c0_i32_43, %c0_i32_44] : memref<4x4x128xf32, #tpu.memory_space<any>> -> memref<1x4x128xf32, #tpu.memory_space<any>>
    %39 = tpu.memref_squeeze %38 : memref<1x4x128xf32, #tpu.memory_space<any>> -> memref<4x128xf32, #tpu.memory_space<any>>
    %40 = tpu.memref_slice %arg2[%c2_i32_40] : memref<4x!tpu.dma_semaphore, #tpu.memory_space<semaphore_mem>> -> memref<1x!tpu.dma_semaphore, #tpu.memory_space<semaphore_mem>>
    %41 = tpu.memref_squeeze %40 : memref<1x!tpu.dma_semaphore, #tpu.memory_space<semaphore_mem>> -> memref<!tpu.dma_semaphore, #tpu.memory_space<semaphore_mem>>
    tpu.wait_dma2 semaphore(%41 : memref<!tpu.dma_semaphore, #tpu.memory_space<semaphore_mem>>) src(%37 : memref<4x128xf32, #tpu.memory_space<any>>) dst(%39 : memref<4x128xf32, #tpu.memory_space<any>>)
    %c3_i32_45 = arith.constant 3 : i32
    %c3_i32_46 = arith.constant 3 : i32
    %c3_i32_47 = arith.constant 3 : i32
    %c0_i32_48 = arith.constant 0 : i32
    %c0_i32_49 = arith.constant 0 : i32
    %42 = tpu.memref_slice %arg0[%c3_i32_45, %c0_i32_48, %c0_i32_49] : memref<4x4x128xf32, #tpu.memory_space<any>> -> memref<1x4x128xf32, #tpu.memory_space<any>>
    %43 = tpu.memref_squeeze %42 : memref<1x4x128xf32, #tpu.memory_space<any>> -> memref<4x128xf32, #tpu.memory_space<any>>
    %c0_i32_50 = arith.constant 0 : i32
    %c0_i32_51 = arith.constant 0 : i32
    %44 = tpu.memref_slice %arg1[%c3_i32_46, %c0_i32_50, %c0_i32_51] : memref<4x4x128xf32, #tpu.memory_space<any>> -> memref<1x4x128xf32, #tpu.memory_space<any>>
    %45 = tpu.memref_squeeze %44 : memref<1x4x128xf32, #tpu.memory_space<any>> -> memref<4x128xf32, #tpu.memory_space<any>>
    %46 = tpu.memref_slice %arg2[%c3_i32_47] : memref<4x!tpu.dma_semaphore, #tpu.memory_space<semaphore_mem>> -> memref<1x!tpu.dma_semaphore, #tpu.memory_space<semaphore_mem>>
    %47 = tpu.memref_squeeze %46 : memref<1x!tpu.dma_semaphore, #tpu.memory_space<semaphore_mem>> -> memref<!tpu.dma_semaphore, #tpu.memory_space<semaphore_mem>>
    tpu.wait_dma2 semaphore(%47 : memref<!tpu.dma_semaphore, #tpu.memory_space<semaphore_mem>>) src(%43 : memref<4x128xf32, #tpu.memory_space<any>>) dst(%45 : memref<4x128xf32, #tpu.memory_space<any>>)
    return
  }
}

</mosaic_0001>

<bundles_post_ra>
// kernel: tpu_custom_call.1
= control target key start
LH: loop header
LB: loop body
LE: loop exit
PB: predicated region body
PF: predicated region fallthrough
CT: control target
= control target key end

     0   :  { %s124_s9 = smov [#allocation2]   ;;  %s125_s10 = smov [#allocation3]   ;;  %s167_s0 = inlined_call_operand.hbm [shape: f32[4,4,128], index: 0, kind: input, shape index: {}]   ;;  %s168_s1 = inlined_call_operand.hbm [shape: f32[4,4,128], index: 1, kind: output, shape index: {}]  }
   0x1   :  { %s19_s8 = scalar_lea.hbm %s167_s0, 64  ;;  %s126_s11 = smov 0  }
   0x2   :  { %18 = dma.general %s167_s0, 64, %s168_s1, %s124_s9, %s125_s10, [#allocation4], %s126_s11, 0  }
   0x3   :  { %s20_s18 = scalar_lea.hbm %s168_s1, 64  ;;  %s35_s21 = scalar_lea.hbm %s167_s0, 128 }
   0x4   :  { %s127_s22 = smov [#allocation2 + $0x1]   ;;  %s128_s23 = smov [#allocation5]  }
   0x5   :  { %34 = dma.general %s19_s8, 64, %s20_s18, %s127_s22, %s128_s23, [#allocation6], %s126_s11, 0  }
   0x6   :  { %s36_s26 = scalar_lea.hbm %s168_s1, 128  ;;  %s51_s29 = scalar_lea.hbm %s167_s0, 192 }
   0x7   :  { %s129_s30 = smov [#allocation2 + $0x2]   ;;  %s130_s2 = smov [#allocation7]  }
   0x8   :  { %50 = dma.general %s35_s21, 64, %s36_s26, %s129_s30, %s130_s2, [#allocation8], %s126_s11, 0  }
   0x9   :  { %s52_s5 = scalar_lea.hbm %s168_s1, 192  ;;  %s131_s6 = smov [#allocation2 + $0x3]  }
   0xa   :  { %s132_s7 = smov [#allocation9]  }
   0xb   :  { %66 = dma.general %s51_s29, 64, %s52_s5, %s131_s6, %s132_s7, [#allocation10], %s126_s11, 0  }
   0xc   :  { %116 = dma.done.wait [#allocation2], 64 }
   0xd   :  { %117 = vsyncadd [#allocation2], 4294967232 }
   0xe   :  { %118 = dma.done.wait [#allocation2 + $0x1], 64 }
   0xf   :  { %119 = vsyncadd [#allocation2 + $0x1], 4294967232 }
  0x10   :  { %120 = dma.done.wait [#allocation2 + $0x2], 64 }
  0x11   :  { %121 = vsyncadd [#allocation2 + $0x2], 4294967232 }
  0x12   :  { %122 = dma.done.wait [#allocation2 + $0x3], 64 }
  0x13   :  { %123 = vsyncadd [#allocation2 + $0x3], 4294967232 }
  0x14   :  { %76 = vsyncmov [#allocation2] }
  0x17   :  { %s77_s0 = vpop.sfrf %76 }
  0x18   :  { %p103_p0 = scmp.ne.s32.totalorder %s77_s0, 0 }
  0x1a   :  { %81 = shalt.err (%p103_p0)  }
  0x1b   :  { %83 = vsyncmov [#allocation2 + $0x1] }
  0x1e   :  { %s84_s8 = vpop.sfrf %83 }
  0x1f   :  { %p104_p1 = scmp.ne.s32.totalorder %s84_s8, 0 }
  0x21   :  { %88 = shalt.err (%p104_p1)  }
  0x22   :  { %90 = vsyncmov [#allocation2 + $0x2] }
  0x25   :  { %s91_s1 = vpop.sfrf %90 }
  0x26   :  { %p105_p2 = scmp.ne.s32.totalorder %s91_s1, 0 }
  0x28   :  { %95 = shalt.err (%p105_p2)  }
  0x29   :  { %97 = vsyncmov [#allocation2 + $0x3] }
  0x2c   :  { %s98_s9 = vpop.sfrf %97 }
  0x2d   :  { %p106_p3 = scmp.ne.s32.totalorder %s98_s9, 0 }
  0x2f   :  { %102 = shalt.err (%p106_p3)  }

</bundles_post_ra>
